<compile_context>
chip_gen: v7x
topology: tpu7x:2x2x1
jax: 0.10.0
libtpu: 0.0.40
codegen_flags: <defaults>
</compile_context>

<pallas_src>
import functools

import jax
import jax.numpy as jnp
from jax.experimental import pallas as pl
from jax.experimental.pallas import tpu as pltpu

MARGIN = 1.0
EPS = 1e-6  # matches F.pairwise_distance default


def _round_up(x, m):
    return (x + m - 1) // m * m


def _chip_defaults():
    """Generation-aware (num_cores, vmem_limit_bytes, tile_budget_bytes, row_cap)."""
    try:
        kind = jax.devices()[0].device_kind.lower()
    except Exception:
        kind = ""
    if "v7" in kind or "7x" in kind:
        # v7x: 2 TCs/chip, only 64 MiB VMEM per core, 3.2 TB/s HBM -> big tiles but < 64 MiB.
        return 2, 48 << 20, 36 << 20, 8192
    if ("v4" in kind or "v5p" in kind) and "lite" not in kind:
        # Megacore chips: 2 TCs, 128 MiB VMEM.
        return 2, 96 << 20, 64 << 20, 16384
    if "v6" in kind:
        # v6e: 1 TC, 128 MiB physical VMEM (32 MiB scoped default) -> raise limit, big tiles.
        return 1, 96 << 20, 80 << 20, 16384
    if "v5" in kind:
        # v5e: 1 TC, 128 MiB physical VMEM (16 MiB scoped default).
        return 1, 64 << 20, 48 << 20, 16384
    # Unknown backend: conservative.
    return 1, 48 << 20, 32 << 20, 8192


def _similarity_loss_kernel(a_ref, t_ref, l_ref, o_ref, acc_ref, *, margin, b_true, k, d,
                            block_rows, steps_per_core):
    # a_ref / t_ref: [bt, k*d] (input dtype), l_ref: [bt, k] f32,
    # o_ref: [1, 1] f32 in SMEM (per-core partial), acc_ref: [bt, k] f32 VMEM scratch.
    core = pl.program_id(0)
    step = pl.program_id(1)

    @pl.when(step == 0)
    def _():
        acc_ref[...] = jnp.zeros_like(acc_ref)

    a = a_ref[...].astype(jnp.float32)          # in-kernel upcast (bf16 stays bf16 over DMA)
    t = t_ref[...].astype(jnp.float32)
    sq = jnp.square(a - t + EPS)                # single lane-dense VPU pass, [bt, k*d]

    # Per-sample squared distance: reduce each contiguous d-lane group -> [bt, k].
    cols = [jnp.sum(sq[:, g * d:(g + 1) * d], axis=-1, keepdims=True) for g in range(k)]
    sq_dist = cols[0] if k == 1 else jnp.concatenate(cols, axis=-1)     # [bt, k]

    dist = jnp.sqrt(sq_dist)                    # one EUP pass on [bt, k]
    hinge = jnp.maximum(margin - dist, 0.0)
    labels = l_ref[...]                         # [bt, k] f32
    loss = labels * sq_dist + (1.0 - labels) * (hinge * hinge)          # [bt, k]

    # Mask padded samples: global sample index of (row r, group g) = (base_row + r) * k + g.
    base_row = (core * steps_per_core + step) * block_rows
    row = jax.lax.broadcasted_iota(jnp.int32, (block_rows, k), 0)
    col = jax.lax.broadcasted_iota(jnp.int32, (block_rows, k), 1)
    loss = jnp.where((base_row + row) * k + col < b_true, loss, 0.0)

    # Vector accumulator: no per-step cross-lane reduce / SMEM read-modify-write.
    acc_ref[...] += loss

    @pl.when(step == pl.num_programs(1) - 1)
    def _():
        o_ref[0, 0] = jnp.sum(acc_ref[...])     # single final reduce per core


def similarity_loss(audio_embeddings, text_embeddings, labels, *, margin=MARGIN,
                    block_rows=None, num_cores=None):
    """audio/text: [B, D] (f32 or bf16), labels: [B] in {0, 1}. Returns scalar f32 loss."""
    B, D = audio_embeddings.shape
    assert text_embeddings.shape == (B, D)
    dtype = audio_embeddings.dtype
    itemsize = jnp.dtype(dtype).itemsize
    sub = 8 * max(1, 4 // itemsize)             # sublane multiple: 8 for f32, 16 for bf16

    def_cores, vmem_limit, tile_budget, row_cap = _chip_defaults()
    if num_cores is None:
        num_cores = def_cores

    # Lane-pack k samples per row when D < 128 (free row-major reshape, no data movement).
    k = max(1, 128 // D) if D < 128 else 1
    packed_d = k * D
    rows = pl.cdiv(B, k)
    rows_per_core = pl.cdiv(rows, num_cores)

    # Batch-tile sizing: fill the generation-aware VMEM budget counting the DMA double
    # buffers AND the ~4 full-width in-kernel f32 temporaries, then spread rows evenly
    # over steps so the tail padding stays below one sublane group.
    if block_rows is None:
        per_row = (2 * 2 * packed_d * itemsize  # 2 inputs x double-buffered DMA
                   + 4 * packed_d * 4           # ~4 full-width f32 temporaries (a, t, sq, slices)
                   + 12 * k)                    # labels (x2 buffers) + accumulator
        bt_cap = min(row_cap, max(sub, (tile_budget // per_row) // sub * sub))
    else:
        bt_cap = max(sub, _round_up(block_rows, sub))
    steps = pl.cdiv(rows_per_core, bt_cap)
    bt = _round_up(pl.cdiv(rows_per_core, steps), sub)
    rows_pad = num_cores * steps * bt
    b_pad = rows_pad * k

    def pack(x):
        x = jnp.pad(x, ((0, b_pad - B), (0, 0)))
        return x.reshape(rows_pad, packed_d)

    a_p = pack(audio_embeddings)                # keep original dtype; cast happens in-kernel
    t_p = pack(text_embeddings)
    l_p = jnp.pad(labels.astype(jnp.float32), (0, b_pad - B)).reshape(rows_pad, k)

    kernel = functools.partial(
        _similarity_loss_kernel, margin=float(margin), b_true=B, k=k, d=D,
        block_rows=bt, steps_per_core=steps)

    in_idx = lambda c, i: (c * steps + i, 0)
    partial_sums = pl.pallas_call(
        kernel,
        out_shape=jax.ShapeDtypeStruct((num_cores, 1), jnp.float32),
        grid=(num_cores, steps),
        in_specs=[
            pl.BlockSpec((bt, packed_d), in_idx),
            pl.BlockSpec((bt, packed_d), in_idx),
            pl.BlockSpec((bt, k), in_idx),
        ],
        out_specs=pl.BlockSpec((1, 1), lambda c, i: (c, 0), memory_space=pltpu.SMEM),
        scratch_shapes=[pltpu.VMEM((bt, k), jnp.float32)],
        compiler_params=pltpu.CompilerParams(
            dimension_semantics=("parallel", "arbitrary"),
            vmem_limit_bytes=vmem_limit),
        cost_estimate=pl.CostEstimate(
            flops=int(6 * B * D),
            transcendentals=int(B),
            bytes_accessed=int(2 * B * D * itemsize + 4 * B + 4 * num_cores)),
    )(a_p, t_p, l_p)

    # Per-core partial sums -> mean over the true batch size.
    return jnp.sum(partial_sums) / B


def _reference(audio, text, labels, margin=MARGIN):
    a = audio.astype(jnp.float32)
    t = text.astype(jnp.float32)
    diff = a - t + EPS
    dist = jnp.sqrt(jnp.sum(diff * diff, axis=-1))
    loss = labels * dist ** 2 + (1.0 - labels) * jnp.maximum(margin - dist, 0.0) ** 2
    return jnp.mean(loss)


if __name__ == "__main__":
    key = jax.random.PRNGKey(0)
    ks = jax.random.split(key, 9)

    # Test 1: small f32 problem, chip-default tiling / core count.
    B, D = 8, 32
    audio = jax.random.normal(ks[0], (B, D), dtype=jnp.float32)
    text = jax.random.normal(ks[1], (B, D), dtype=jnp.float32)
    labels = jax.random.bernoulli(ks[2], p=0.5, shape=(B,)).astype(jnp.float32)
    loss = jax.block_until_ready(similarity_loss(audio, text, labels))
    ref = jax.block_until_ready(_reference(audio, text, labels))
    assert jnp.allclose(loss, ref, rtol=1e-4, atol=1e-5), (loss, ref)

    # Test 2: bf16 embeddings, batch not a multiple of the packing/tiling factors,
    # forced 2-core grid with multiple steps per core (accumulator + tail masking + bf16 DMA).
    B2, D2 = 300, 32
    audio2 = jax.random.normal(ks[3], (B2, D2), dtype=jnp.bfloat16)
    text2 = jax.random.normal(ks[4], (B2, D2), dtype=jnp.bfloat16)
    labels2 = jax.random.bernoulli(ks[5], p=0.5, shape=(B2,)).astype(jnp.float32)
    loss2 = jax.block_until_ready(
        similarity_loss(audio2, text2, labels2, block_rows=16, num_cores=2))
    ref2 = jax.block_until_ready(_reference(audio2, text2, labels2))
    assert jnp.allclose(loss2, ref2, rtol=1e-4, atol=1e-5), (loss2, ref2)

    # Test 3: D >= 128 (no lane packing, k == 1 path).
    B3, D3 = 24, 256
    audio3 = jax.random.normal(ks[6], (B3, D3), dtype=jnp.float32)
    text3 = jax.random.normal(ks[7], (B3, D3), dtype=jnp.float32)
    labels3 = jax.random.bernoulli(ks[8], p=0.5, shape=(B3,)).astype(jnp.float32)
    loss3 = jax.block_until_ready(similarity_loss(audio3, text3, labels3))
    ref3 = jax.block_until_ready(_reference(audio3, text3, labels3))
    assert jnp.allclose(loss3, ref3, rtol=1e-4, atol=1e-5), (loss3, ref3)

    print("KERNEL_OK")
</pallas_src>

<mosaic_0001>
module attributes {stable_mosaic.version = 11 : i64} {
  func.func @_similarity_loss_kernel(%arg0: i32, %arg1: i32, %arg2: memref<8x128xf32, #tpu.memory_space<vmem>>, %arg3: memref<8x128xf32, #tpu.memory_space<vmem>>, %arg4: memref<8x4xf32, #tpu.memory_space<vmem>>, %arg5: memref<1x1xf32, #tpu.memory_space<smem>>, %arg6: memref<8x4xf32, #tpu.memory_space<vmem>>) attributes {dimension_semantics = [#tpu.dimension_semantics<parallel>, #tpu.dimension_semantics<arbitrary>], iteration_bounds = array<i64: 1, 1>, scalar_prefetch = 0 : i64, scratch_operands = 1 : i64, tpu.core_type = #tpu.core_type<tc>, window_params = [{transform_indices = @transform_0, window_bounds = array<i64: 8, 128>}, {transform_indices = @transform_1, window_bounds = array<i64: 8, 128>}, {transform_indices = @transform_2, window_bounds = array<i64: 8, 4>}, {transform_indices = @transform_3, window_bounds = array<i64: 1, 1>}]} {
    %c0_i32 = arith.constant 0 : i32
    %0 = arith.cmpi eq, %arg1, %c0_i32 : i32
    %1 = arith.extui %0 : i1 to i32
    %c0_i32_0 = arith.constant 0 : i32
    %2 = arith.cmpi ne, %1, %c0_i32_0 : i32
    scf.if %2 {
      %cst_21 = arith.constant 0.000000e+00 : f32
      %54 = vector.broadcast %cst_21 : f32 to vector<8x4xf32>
      %c0_22 = arith.constant 0 : index
      %c0_23 = arith.constant 0 : index
      %55 = vector.load %arg6[%c0_22, %c0_23] : memref<8x4xf32, #tpu.memory_space<vmem>>, vector<8x4xf32>
      tpu.vector_store %arg6[%c0_22, %c0_23], %54 {strides = array<i32>} : memref<8x4xf32, #tpu.memory_space<vmem>>, vector<8x4xf32>,
    } else {
    }
    %c0 = arith.constant 0 : index
    %c0_1 = arith.constant 0 : index
    %3 = vector.load %arg2[%c0, %c0_1] : memref<8x128xf32, #tpu.memory_space<vmem>>, vector<8x128xf32>
    %c0_2 = arith.constant 0 : index
    %c0_3 = arith.constant 0 : index
    %4 = vector.load %arg3[%c0_2, %c0_3] : memref<8x128xf32, #tpu.memory_space<vmem>>, vector<8x128xf32>
    %5 = arith.subf %3, %4 : vector<8x128xf32>
    %cst = arith.constant 9.99999997E-7 : f32
    %6 = vector.broadcast %cst : f32 to vector<8x128xf32>
    %7 = arith.addf %5, %6 : vector<8x128xf32>
    %8 = arith.mulf %7, %7 : vector<8x128xf32>
    %9 = vector.extract_strided_slice %8 {offsets = [0, 0], sizes = [8, 32], strides = [1, 1]} : vector<8x128xf32> to vector<8x32xf32>
    %cst_4 = arith.constant dense<0.000000e+00> : vector<8xf32>
    %10 = vector.multi_reduction <add>, %9, %cst_4 [1] : vector<8x32xf32> to vector<8xf32>
    %11 = vector.shape_cast %10 : vector<8xf32> to vector<8x1xf32>
    %12 = vector.extract_strided_slice %8 {offsets = [0, 32], sizes = [8, 32], strides = [1, 1]} : vector<8x128xf32> to vector<8x32xf32>
    %cst_5 = arith.constant dense<0.000000e+00> : vector<8xf32>
    %13 = vector.multi_reduction <add>, %12, %cst_5 [1] : vector<8x32xf32> to vector<8xf32>
    %14 = vector.shape_cast %13 : vector<8xf32> to vector<8x1xf32>
    %15 = vector.extract_strided_slice %8 {offsets = [0, 64], sizes = [8, 32], strides = [1, 1]} : vector<8x128xf32> to vector<8x32xf32>
    %cst_6 = arith.constant dense<0.000000e+00> : vector<8xf32>
    %16 = vector.multi_reduction <add>, %15, %cst_6 [1] : vector<8x32xf32> to vector<8xf32>
    %17 = vector.shape_cast %16 : vector<8xf32> to vector<8x1xf32>
    %18 = vector.extract_strided_slice %8 {offsets = [0, 96], sizes = [8, 32], strides = [1, 1]} : vector<8x128xf32> to vector<8x32xf32>
    %cst_7 = arith.constant dense<0.000000e+00> : vector<8xf32>
    %19 = vector.multi_reduction <add>, %18, %cst_7 [1] : vector<8x32xf32> to vector<8xf32>
    %20 = vector.shape_cast %19 : vector<8xf32> to vector<8x1xf32>
    %21 = tpu.concatenate %11, %14, %17, %20 in 1 : vector<8x1xf32>, vector<8x1xf32>, vector<8x1xf32>, vector<8x1xf32> -> vector<8x4xf32>
    %22 = math.sqrt %21 : vector<8x4xf32>
    %cst_8 = arith.constant 1.000000e+00 : f32
    %23 = vector.broadcast %cst_8 : f32 to vector<8x4xf32>
    %24 = arith.subf %23, %22 : vector<8x4xf32>
    %cst_9 = arith.constant 0.000000e+00 : f32
    %25 = vector.broadcast %cst_9 : f32 to vector<8x4xf32>
    %26 = arith.maximumf %24, %25 : vector<8x4xf32>
    %c0_10 = arith.constant 0 : index
    %c0_11 = arith.constant 0 : index
    %27 = vector.load %arg4[%c0_10, %c0_11] : memref<8x4xf32, #tpu.memory_space<vmem>>, vector<8x4xf32>
    %28 = arith.mulf %27, %21 : vector<8x4xf32>
    %cst_12 = arith.constant 1.000000e+00 : f32
    %29 = vector.broadcast %cst_12 : f32 to vector<8x4xf32>
    %30 = arith.subf %29, %27 : vector<8x4xf32>
    %31 = arith.mulf %26, %26 : vector<8x4xf32>
    %32 = arith.mulf %30, %31 : vector<8x4xf32>
    %33 = arith.addf %28, %32 : vector<8x4xf32>
    %c1_i32 = arith.constant 1 : i32
    %34 = arith.muli %arg0, %c1_i32 : i32
    %35 = arith.addi %34, %arg1 : i32
    %c8_i32 = arith.constant 8 : i32
    %36 = arith.muli %35, %c8_i32 : i32
    %37 = tpu.iota {dimensions = array<i32: 0>} : vector<8x4xi32>
    %38 = tpu.iota {dimensions = array<i32: 1>} : vector<8x4xi32>
    %39 = vector.broadcast %36 : i32 to vector<8x4xi32>
    %40 = arith.addi %39, %37 : vector<8x4xi32>
    %c4_i32 = arith.constant 4 : i32
    %41 = vector.broadcast %c4_i32 : i32 to vector<8x4xi32>
    %42 = arith.muli %40, %41 : vector<8x4xi32>
    %43 = arith.addi %42, %38 : vector<8x4xi32>
    %c8_i32_13 = arith.constant 8 : i32
    %44 = vector.broadcast %c8_i32_13 : i32 to vector<8x4xi32>
    %45 = arith.cmpi slt, %43, %44 : vector<8x4xi32>
    %cst_14 = arith.constant 0.000000e+00 : f32
    %46 = vector.broadcast %cst_14 : f32 to vector<8x4xf32>
    %47 = arith.select %45, %33, %46 : vector<8x4xi1>, vector<8x4xf32>
    %c0_15 = arith.constant 0 : index
    %c0_16 = arith.constant 0 : index
    %48 = vector.load %arg6[%c0_15, %c0_16] : memref<8x4xf32, #tpu.memory_space<vmem>>, vector<8x4xf32>
    %49 = arith.addf %48, %47 : vector<8x4xf32>
    %c0_17 = arith.constant 0 : index
    %c0_18 = arith.constant 0 : index
    %50 = vector.load %arg6[%c0_17, %c0_18] : memref<8x4xf32, #tpu.memory_space<vmem>>, vector<8x4xf32>
    tpu.vector_store %arg6[%c0_17, %c0_18], %49 {strides = array<i32>} : memref<8x4xf32, #tpu.memory_space<vmem>>, vector<8x4xf32>,
    %c0_i32_19 = arith.constant 0 : i32
    %51 = arith.cmpi eq, %arg1, %c0_i32_19 : i32
    %52 = arith.extui %51 : i1 to i32
    %c0_i32_20 = arith.constant 0 : i32
    %53 = arith.cmpi ne, %52, %c0_i32_20 : i32
    scf.if %53 {
      %c0_21 = arith.constant 0 : index
      %c0_22 = arith.constant 0 : index
      %54 = vector.load %arg6[%c0_21, %c0_22] : memref<8x4xf32, #tpu.memory_space<vmem>>, vector<8x4xf32>
      %55 = vector.shape_cast %54 : vector<8x4xf32> to vector<1x8x4xf32>
      %cst_23 = arith.constant dense<0.000000e+00> : vector<1xf32>
      %56 = vector.multi_reduction <add>, %55, %cst_23 [1, 2] : vector<1x8x4xf32> to vector<1xf32>
      %57 = vector.shape_cast %56 : vector<1xf32> to vector<1x1x1xf32>
      %58 = vector.extract %57[0, 0, 0] : f32 from vector<1x1x1xf32>
      %c0_24 = arith.constant 0 : index
      %c0_25 = arith.constant 0 : index
      %59 = memref.load %arg5[%c0_24, %c0_25] : memref<1x1xf32, #tpu.memory_space<smem>>
      memref.store %58, %arg5[%c0_24, %c0_25] : memref<1x1xf32, #tpu.memory_space<smem>>
    } else {
    }
    return
  }
  func.func @transform_0(%arg0: i32, %arg1: i32) -> (i32, i32) {
    %c1_i32 = arith.constant 1 : i32
    %0 = arith.muli %arg0, %c1_i32 : i32
    %1 = arith.addi %0, %arg1 : i32
    %c0_i32 = arith.constant 0 : i32
    %c0_i32_0 = arith.constant 0 : i32
    return %1, %c0_i32 : i32, i32
  }
  func.func @transform_1(%arg0: i32, %arg1: i32) -> (i32, i32) {
    %c1_i32 = arith.constant 1 : i32
    %0 = arith.muli %arg0, %c1_i32 : i32
    %1 = arith.addi %0, %arg1 : i32
    %c0_i32 = arith.constant 0 : i32
    %c0_i32_0 = arith.constant 0 : i32
    return %1, %c0_i32 : i32, i32
  }
  func.func @transform_2(%arg0: i32, %arg1: i32) -> (i32, i32) {
    %c1_i32 = arith.constant 1 : i32
    %0 = arith.muli %arg0, %c1_i32 : i32
    %1 = arith.addi %0, %arg1 : i32
    %c0_i32 = arith.constant 0 : i32
    %c0_i32_0 = arith.constant 0 : i32
    return %1, %c0_i32 : i32, i32
  }
  func.func @transform_3(%arg0: i32, %arg1: i32) -> (i32, i32) {
    %c0_i32 = arith.constant 0 : i32
    %c0_i32_0 = arith.constant 0 : i32
    return %arg0, %c0_i32 : i32, i32
  }
}

</mosaic_0001>

<bundles_post_ra>
// kernel: tpu_custom_call.1
= control target key start
LH: loop header
LB: loop body
LE: loop exit
PB: predicated region body
PF: predicated region fallthrough
CT: control target
= control target key end

     0   :  { %8 = vsyncpa [#allocation4], 0  ;;  %s283_s0 = inlined_call_operand.vmem [shape: f32[8,128], index: 0, kind: input, shape index: {}]   ;;  %s284_s1 = inlined_call_operand.hbm [shape: f32[8,128], index: 1, kind: input, shape index: {}]   ;;  %s285_s2 = inlined_call_operand.vmem [shape: f32[8,4], index: 2, kind: input, shape index: {}]   ;;  %s286_s3 = inlined_call_operand.hbm [shape: f32[1,1], index: 3, kind: output, shape index: {}]  }
   0x1   :  { %9 = vsyncpa [#allocation5], 0  ;;  %s224_s12 = smov [#allocation3]   ;;  %s188_s16 = scalar_lea.hbm %s284_s1, 128 }
   0x2   :  { %s27_s13 = sshll.u32 %s224_s12, 4  ;;  %p189_p0 = scmp.ne.s32.totalorder %s284_s1, %s188_s16  ;;  %s28_s13 = int_to_ptr.vmem [resolvable:$true] %s27_s13 }
   0x3   :  { %p192_p1 = scmp.lt.u32.totalorder %s188_s16, %s284_s1 }
   0x5   :  { %p194_p2 = pnand %p192_p1, %p189_p0 }
   0x7   :  { %197 = shalt.err (!%p194_p2)
}
   0x8   :  { %s198_s21 = scalar_lea.vmem %s28_s13, 128  ;;  %p203_p4 = scmp.lt.s32.totalorder %s28_s13, %s28_s13 }
   0x9   :  { %p199_p3 = scmp.ne.s32.totalorder %s28_s13, %s198_s21  ;;  %p204_p5 = scmp.lt.s32.totalorder %s198_s21, %s198_s21 }
   0xb   :  { %p205_p6 = por %p204_p5, %p203_p4 }
   0xd   :  { %p206_p7 = pnand %p205_p6, %p199_p3 }
   0xf   :  { %209 = shalt.err (!%p206_p7)
}
  0x10   :  { %30 = dma.hbm_to_vmem [thread:$0]  %s284_s1, 128, %s28_s13, [#allocation4]  }
  0x11   :  { %220 = dma.done.wait [#allocation4], 128  }
  0x12   :  { %221 = vsyncadd [#allocation4], 4294967168  ;;  %v71_v0 = vld [vmem:[%s283_s0] sm:$0xff]  ;;  %v72_v1 = vld [vmem:[#allocation3] sm:$0xff]  ;;  %s225_s26 = smov 96   ;;  %s226_s27 = smov 32   ;;  %v122_v20 = vlaneseq }
  0x13   :  { %v73_v2 = vsub.f32 %v71_v0, %v72_v1  ;;  %s227_s28 = smov 64   ;;  %vm76_vm0 = vcmask 261120   ;;  %vm69_vm1 = vcmask 31744   ;;  %v228_v12 = vmov 0.0   ;;  %v114_v30 = vld [vmem:[%s285_s2] sm:$0xff]  ;;  %s210_s4 = scalar_lea.hbm %s286_s3, 16 }
  0x14   :  { %70 = vst.msk [vmem:[#allocation2] sm:$0xff] %vm69_vm1, %v228_v12  ;;  %vm99_vm2 = vcmask 7168   ;;  %vm101_vm3 = vcmask 15360   ;;  %vm103_vm4 = vcmask 23552   ;;  %v123_v22 = vshrl.u32 %v122_v20, 7  ;;  %p211_p8 = scmp.ne.s32.totalorder %s286_s3, %s210_s4  ;;  %p214_p9 = scmp.lt.u32.totalorder %s210_s4, %s286_s3 }
  0x15   :  { %v74_v3 = vadd.f32 1e-06, %v73_v2  ;;  %v125_v27 = vand.u32 127, %v122_v20  ;;  %v116_v31 = vsub.f32 1.0, %v114_v30 }
  0x16   :  { %v128_v28 = vmul.u32 4, %v123_v22  ;;  %p216_p10 = pnand %p214_p9, %p211_p8 }
  0x17   :  { %v75_v4 = vmul.f32 %v74_v3, %v74_v3 }
  0x18   :  { %v129_v33 = vadd.s32 %v128_v28, %v125_v27 }
  0x19   :  { %81 = vrot.lane.b32.xlu0 %v75_v4, %s225_s26  ;;  %93 = vrot.lane.b32.xlu1 %v75_v4, %s226_s27  ;;  %v77_v5 = vsel %vm76_vm0, %v75_v4, 0.0 }
  0x1a   :  { %vm130_vm7 = vcmp.lt.s32.totalorder %v129_v33, 8 }
  0x1b   :  { %v132_v38 = vld [vmem:[#allocation2] sm:$0xff] }
  0x1d   :  { %87 = vrot.lane.b32.xlu0 %v75_v4, %s227_s28 }
  0x3d   :  { %78 = vadd.xlane.f32.xlu1 %v77_v5 }
  0x8b   :  { %v82_v6 = vpop.permute.xlu0 %81  ;;  %v94_v7 = vpop.permute.xlu1 %93 }
  0x8c   :  { %v84_v8 = vsel %vm76_vm0, %v82_v6, 0.0  ;;  %v96_v9 = vsel %vm76_vm0, %v94_v7, 0.0 }
  0x8d   :  { %85 = vadd.xlane.f32.xlu0 %v84_v8  ;;  %97 = vadd.xlane.f32.xlu1 %v96_v9 }
  0x8f   :  { %v88_v10 = vpop.permute.xlu0 %87 }
  0x90   :  { %v90_v11 = vsel %vm76_vm0, %v88_v10, 0.0 }
  0x91   :  { %91 = vadd.xlane.f32.xlu0 %v90_v11 }
  0xca   :  { %v79_v13 = vpop.xlane.xlu1 %78 }
 0x11a   :  { %v86_v14 = vpop.xlane.xlu0 %85  ;;  %v98_v15 = vpop.xlane.xlu1 %97 }
 0x11b   :  { %v100_v16 = vsel %vm99_vm2, %v79_v13, %v86_v14 }
 0x11e   :  { %v92_v17 = vpop.xlane.xlu0 %91 }
 0x11f   :  { %v102_v18 = vsel %vm101_vm3, %v100_v16, %v92_v17 }
 0x120   :  { %v104_v19 = vsel %vm103_vm4, %v102_v18, %v98_v15 }
 0x121   :  { %186 = vrsqrt.f32 %v104_v19  ;;  %vm107_vm5 = vcmp.eq.f32.partialorder %v104_v19, inf  ;;  %v110_v24 = vand.u32 2147483648, %v104_v19  ;;  %vm109_vm6 = vcmp.eq.f32.partialorder %v104_v19, 0.0 }
 0x122   :  { %v115_v35 = vmul.f32 %v114_v30, %v104_v19 }
 0x12b   :  { %v187_v21 = vpop.eup %186 }
 0x12c   :  { %v106_v23 = vmul.f32 %v187_v21, %v104_v19 }
 0x12e   :  { %v108_v25 = vsel %vm107_vm5, %v104_v19, %v106_v23 }
 0x12f   :  { %v111_v26 = vsel %vm109_vm6, %v110_v24, %v108_v25 }
 0x130   :  { %v112_v29 = vsub.f32 1.0, %v111_v26 }
 0x132   :  { %v113_v32 = vmax.f32 %v112_v29, 0.0 }
 0x134   :  { %v117_v34 = vmul.f32 %v113_v32, %v113_v32 }
 0x136   :  { %v118_v36 = vmul.f32 %v117_v34, %v116_v31 }
 0x138   :  { %v119_v37 = vadd.f32 %v118_v36, %v115_v35 }
 0x13a   :  { %v131_v39 = vsel %vm130_vm7, %v119_v37, 0.0 }
 0x13b   :  { %v133_v40 = vadd.f32 %v132_v38, %v131_v39 }
 0x13d   :  { %135 = vst.msk [vmem:[#allocation2] sm:$0xff] %vm69_vm1, %v133_v40 }
 0x144   :  { %v139_v41 = vld [vmem:[#allocation2] sm:$0xff] }
 0x145   :  { %v140_v42 = vsel %vm69_vm1, %v139_v41, 0.0 }
 0x146   :  { %141 = vadd.xlane.f32.xlu0 %v140_v42 }
 0x1d3   :  { %v142_v43 = vpop.xlane.xlu0 %141 }
 0x1d4   :  { %v143_v44 = vrot.slane %v142_v43, 4 }
 0x1d6   :  { %v144_v45 = vadd.f32 %v143_v44, %v142_v43 }
 0x1d8   :  { %v145_v46 = vrot.slane %v144_v45, 2 }
 0x1da   :  { %v146_v47 = vadd.f32 %v145_v46, %v144_v45 }
 0x1dc   :  { %v147_v48 = vrot.slane %v146_v47, 1 }
 0x1de   :  { %v148_v49 = vadd.f32 %v147_v48, %v146_v47 }
 0x1e0   :  { %178 = vpush %v148_v49 }
 0x211   :  { %s179_s2 = spop %178 }
 0x212   :  { %151 = sst [smem:[#allocation6]] %s179_s2 }
 0x213   :  { %219 = shalt.err (!%p216_p10)
}
 0x214   :  { %s229_s9 = smov [#allocation6]  }
 0x215   :  { %159 = dma.smem_to_hbm %s229_s9, 16, %s286_s3, [#allocation5]  }
 0x216   :  { %222 = dma.done.wait [#allocation5], 16  }
 0x217   :  { %223 = vsyncadd [#allocation5], 4294967280 }
 0x218   :  { %163 = sfence }
 0x219   :  { %164 = vsyncpa [#allocation4], 1 }
 0x21a   :  { %165 = vsyncpa [#allocation5], 1 }

</bundles_post_ra>
